<compile_context>
chip_gen: v5e
topology: v5e:2x2
jax: 0.10.0
libtpu: 0.0.40
codegen_flags: <defaults>
</compile_context>

<pallas_src>
import functools

import jax
import jax.numpy as jnp
import numpy as np
from jax.experimental import pallas as pl
from jax.experimental.pallas import tpu as pltpu


def _round_up(x, m):
    return (x + m - 1) // m * m


def _rnn_seq_kernel(x_ref, h0_ref, wx_ref, wh_ref, b_ref, z_ref, h_scr, *, hp):
    """One grid step == one RNN timestep.

    x_ref  : (1, Bp, Ip)  this timestep's (padded) inputs
    h0_ref : (Bp, Hp)     initial hidden state (resident; only read at t == 0)
    wx_ref : (Ip, Np)     fused [i2h | i2o] weight rows for the input part   (resident)
    wh_ref : (Hp, Np)     fused [i2h | i2o] weight rows for the hidden part  (resident)
    b_ref  : (1, Np)      fused bias                                          (resident)
    z_ref  : (1, Bp, Np)  fused result slab: [:, :, :Hp] = new hidden, [:, :, Hp:] = output
    h_scr  : (Bp, Hp)     VMEM scratch carrying the hidden state across grid steps
    """
    t = pl.program_id(0)

    @pl.when(t == 0)
    def _():
        h_scr[...] = h0_ref[...]

    x_t = x_ref[0]                     # (Bp, Ip)
    h = h_scr[...]                     # (Bp, Hp)
    # Fused cell:  z = [x, h] @ [Wx ; Wh] + b  ==  x @ Wx + h @ Wh + b
    z = (jnp.dot(x_t, wx_ref[...], preferred_element_type=jnp.float32)
         + jnp.dot(h, wh_ref[...], preferred_element_type=jnp.float32)
         + b_ref[...])                 # (Bp, Np)
    z_ref[0] = z.astype(z_ref.dtype)   # single lane-dense store per step
    h_scr[...] = z[:, :hp]             # carry next hidden (padded lanes stay zero)


def init_rnn_params(key, input_size, hidden_size, output_size):
    """nn.Linear-shaped params (weights stored transposed: (in_features, out_features))."""
    C = input_size + hidden_size
    k1, k2, k3, k4 = jax.random.split(key, 4)
    bound = 1.0 / np.sqrt(C)   # PyTorch Linear default: U(-1/sqrt(fan_in), 1/sqrt(fan_in))
    return {
        "w_i2h": jax.random.uniform(k1, (C, hidden_size), jnp.float32, -bound, bound),
        "b_i2h": jax.random.uniform(k2, (hidden_size,), jnp.float32, -bound, bound),
        "w_i2o": jax.random.uniform(k3, (C, output_size), jnp.float32, -bound, bound),
        "b_i2o": jax.random.uniform(k4, (output_size,), jnp.float32, -bound, bound),
    }


def pack_rnn_params(params, input_size, hidden_size, output_size):
    """Split weight rows into input/hidden blocks, fuse i2h|i2o along the output dim,
    and zero-pad everything to lane-dense (multiple-of-128) shapes. Done once."""
    I, H, O = input_size, hidden_size, output_size
    Ip = _round_up(I, 128)
    Hp = _round_up(H, 128)
    Op = _round_up(O, 128)
    Np = Hp + Op

    w_i2h, w_i2o = params["w_i2h"], params["w_i2o"]   # (C, H), (C, O) with C = I + H
    wx = jnp.zeros((Ip, Np), jnp.float32)
    wx = wx.at[:I, :H].set(w_i2h[:I])
    wx = wx.at[:I, Hp:Hp + O].set(w_i2o[:I])
    wh = jnp.zeros((Hp, Np), jnp.float32)
    wh = wh.at[:H, :H].set(w_i2h[I:])
    wh = wh.at[:H, Hp:Hp + O].set(w_i2o[I:])
    b = jnp.zeros((1, Np), jnp.float32)
    b = b.at[0, :H].set(params["b_i2h"])
    b = b.at[0, Hp:Hp + O].set(params["b_i2o"])
    return {"wx": wx, "wh": wh, "b": b,
            "I": I, "H": H, "O": O, "Ip": Ip, "Hp": Hp, "Np": Np}


def rnn_forward_seq(xs, h0, packed):
    """Run T fused RNN steps in ONE pallas_call.

    xs : (T, B, input_size) float32
    h0 : (B, hidden_size)   float32
    Returns (outputs (T, B, output_size), last_hidden (B, hidden_size)).
    """
    T, B, I = xs.shape
    H, O = packed["H"], packed["O"]
    Ip, Hp, Np = packed["Ip"], packed["Hp"], packed["Np"]
    Bp = _round_up(max(B, 8), 8)   # sublane-aligned batch

    xs_p = jnp.zeros((T, Bp, Ip), jnp.float32).at[:, :B, :I].set(xs)
    h0_p = jnp.zeros((Bp, Hp), jnp.float32).at[:B, :H].set(h0)

    kernel = functools.partial(_rnn_seq_kernel, hp=Hp)
    z = pl.pallas_call(
        kernel,
        out_shape=jax.ShapeDtypeStruct((T, Bp, Np), jnp.float32),
        grid_spec=pltpu.PrefetchScalarGridSpec(
            num_scalar_prefetch=0,
            grid=(T,),
            in_specs=[
                pl.BlockSpec((1, Bp, Ip), lambda t: (t, 0, 0)),   # x_t (streamed)
                pl.BlockSpec((Bp, Hp), lambda t: (0, 0)),          # h0 (resident)
                pl.BlockSpec((Ip, Np), lambda t: (0, 0)),          # Wx (resident)
                pl.BlockSpec((Hp, Np), lambda t: (0, 0)),          # Wh (resident)
                pl.BlockSpec((1, Np), lambda t: (0, 0)),           # bias (resident)
            ],
            out_specs=pl.BlockSpec((1, Bp, Np), lambda t: (t, 0, 0)),
            scratch_shapes=[pltpu.VMEM((Bp, Hp), jnp.float32)],    # hidden carry
        ),
        compiler_params=pltpu.CompilerParams(
            dimension_semantics=("arbitrary",)),   # recurrent: sequential over T
    )(xs_p, h0_p, packed["wx"], packed["wh"], packed["b"])

    outputs = z[:, :B, Hp:Hp + O]   # (T, B, O)
    hidden = z[T - 1, :B, :H]       # (B, H)
    return outputs, hidden


def rnn_forward(input_tensor, hidden_tensor, packed):
    """Exact single-step RNN.forward semantics for 1-D tensors (matches PyTorch)."""
    outs, hid = rnn_forward_seq(input_tensor[None, None, :],
                                hidden_tensor[None, :], packed)
    return outs[0, 0], hid[0]


if __name__ == "__main__":
    input_size, hidden_size, output_size = 16, 32, 8
    T, B = 8, 8

    key = jax.random.PRNGKey(0)
    pkey, xkey, skey = jax.random.split(key, 3)
    params = init_rnn_params(pkey, input_size, hidden_size, output_size)
    packed = pack_rnn_params(params, input_size, hidden_size, output_size)

    # --- single-step (exact RNN.forward semantics, 1-D tensors) ---
    x1 = jax.random.normal(xkey, (input_size,), jnp.float32)
    h0_1 = jnp.zeros((hidden_size,), jnp.float32)               # RNN.init_hidden()
    out1, hid1 = rnn_forward(x1, h0_1, packed)
    out1, hid1 = jax.block_until_ready((out1, hid1))

    combined = jnp.concatenate([x1, h0_1])
    ref_hid1 = combined @ params["w_i2h"] + params["b_i2h"]
    ref_out1 = combined @ params["w_i2o"] + params["b_i2o"]
    np.testing.assert_allclose(np.asarray(out1), np.asarray(ref_out1), rtol=1e-4, atol=1e-5)
    np.testing.assert_allclose(np.asarray(hid1), np.asarray(ref_hid1), rtol=1e-4, atol=1e-5)

    # --- fused multi-step batched sequence (time loop inside the kernel) ---
    xs = jax.random.normal(skey, (T, B, input_size), jnp.float32)
    h0 = jnp.zeros((B, hidden_size), jnp.float32)
    outs, hid = rnn_forward_seq(xs, h0, packed)
    outs, hid = jax.block_until_ready((outs, hid))

    ref_h = h0
    ref_outs = []
    for t in range(T):
        comb = jnp.concatenate([xs[t], ref_h], axis=-1)
        ref_outs.append(comb @ params["w_i2o"] + params["b_i2o"])
        ref_h = comb @ params["w_i2h"] + params["b_i2h"]
    ref_outs = jnp.stack(ref_outs)
    np.testing.assert_allclose(np.asarray(outs), np.asarray(ref_outs), rtol=1e-4, atol=1e-5)
    np.testing.assert_allclose(np.asarray(hid), np.asarray(ref_h), rtol=1e-4, atol=1e-5)

    assert outs.shape == (T, B, output_size) and hid.shape == (B, hidden_size)
    print("KERNEL_OK")
</pallas_src>

<mosaic_0001>
module attributes {stable_mosaic.version = 11 : i64} {
  func.func @_rnn_seq_kernel(%arg0: i32, %arg1: memref<1x8x128xf32, #tpu.memory_space<vmem>>, %arg2: memref<8x128xf32, #tpu.memory_space<vmem>>, %arg3: memref<128x256xf32, #tpu.memory_space<vmem>>, %arg4: memref<128x256xf32, #tpu.memory_space<vmem>>, %arg5: memref<1x256xf32, #tpu.memory_space<vmem>>, %arg6: memref<1x8x256xf32, #tpu.memory_space<vmem>>, %arg7: memref<8x128xf32, #tpu.memory_space<vmem>>) attributes {dimension_semantics = [#tpu.dimension_semantics<arbitrary>], iteration_bounds = array<i64: 1>, scalar_prefetch = 0 : i64, scratch_operands = 1 : i64, tpu.core_type = #tpu.core_type<tc>, window_params = [{transform_indices = @transform_0, window_bounds = array<i64: 1, 8, 128>}, {pipeline_mode = #tpu.pipeline_mode<synchronous>, transform_indices = @transform_1, window_bounds = array<i64: 8, 128>}, {pipeline_mode = #tpu.pipeline_mode<synchronous>, transform_indices = @transform_2, window_bounds = array<i64: 128, 256>}, {pipeline_mode = #tpu.pipeline_mode<synchronous>, transform_indices = @transform_3, window_bounds = array<i64: 128, 256>}, {pipeline_mode = #tpu.pipeline_mode<synchronous>, transform_indices = @transform_4, window_bounds = array<i64: 1, 256>}, {transform_indices = @transform_5, window_bounds = array<i64: 1, 8, 256>}]} {
    %c0_i32 = arith.constant 0 : i32
    %0 = arith.cmpi eq, %arg0, %c0_i32 : i32
    %1 = arith.extui %0 : i1 to i32
    %c0_i32_0 = arith.constant 0 : i32
    %2 = arith.cmpi ne, %1, %c0_i32_0 : i32
    scf.if %2 {
      %c0_17 = arith.constant 0 : index
      %c0_18 = arith.constant 0 : index
      %19 = vector.load %arg2[%c0_17, %c0_18] : memref<8x128xf32, #tpu.memory_space<vmem>>, vector<8x128xf32>
      %c0_19 = arith.constant 0 : index
      %c0_20 = arith.constant 0 : index
      %20 = vector.load %arg7[%c0_19, %c0_20] : memref<8x128xf32, #tpu.memory_space<vmem>>, vector<8x128xf32>
      tpu.vector_store %arg7[%c0_19, %c0_20], %19 {strides = array<i32>} : memref<8x128xf32, #tpu.memory_space<vmem>>, vector<8x128xf32>,
    } else {
    }
    %c0 = arith.constant 0 : index
    %c0_1 = arith.constant 0 : index
    %c0_2 = arith.constant 0 : index
    %3 = vector.load %arg1[%c0, %c0_1, %c0_2] : memref<1x8x128xf32, #tpu.memory_space<vmem>>, vector<1x8x128xf32>
    %4 = vector.shape_cast %3 : vector<1x8x128xf32> to vector<8x128xf32>
    %c0_3 = arith.constant 0 : index
    %c0_4 = arith.constant 0 : index
    %5 = vector.load %arg7[%c0_3, %c0_4] : memref<8x128xf32, #tpu.memory_space<vmem>>, vector<8x128xf32>
    %c0_5 = arith.constant 0 : index
    %c0_6 = arith.constant 0 : index
    %6 = vector.load %arg3[%c0_5, %c0_6] : memref<128x256xf32, #tpu.memory_space<vmem>>, vector<128x256xf32>
    %cst = arith.constant dense<0.000000e+00> : vector<8x256xf32>
    %7 = tpu.matmul %4, %6, %cst {dimension_numbers = #tpu.dot_dimension_numbers<[1], [0], [0], [1], [0, 0, 1, 1], [], []>} : vector<8x128xf32>, vector<128x256xf32>, vector<8x256xf32> -> vector<8x256xf32>
    %c0_7 = arith.constant 0 : index
    %c0_8 = arith.constant 0 : index
    %8 = vector.load %arg4[%c0_7, %c0_8] : memref<128x256xf32, #tpu.memory_space<vmem>>, vector<128x256xf32>
    %cst_9 = arith.constant dense<0.000000e+00> : vector<8x256xf32>
    %9 = tpu.matmul %5, %8, %cst_9 {dimension_numbers = #tpu.dot_dimension_numbers<[1], [0], [0], [1], [0, 0, 1, 1], [], []>} : vector<8x128xf32>, vector<128x256xf32>, vector<8x256xf32> -> vector<8x256xf32>
    %10 = arith.addf %7, %9 : vector<8x256xf32>
    %c0_10 = arith.constant 0 : index
    %c0_11 = arith.constant 0 : index
    %11 = vector.load %arg5[%c0_10, %c0_11] : memref<1x256xf32, #tpu.memory_space<vmem>>, vector<1x256xf32>
    %12 = vector.broadcast %11 : vector<1x256xf32> to vector<8x256xf32>
    %13 = arith.addf %10, %12 : vector<8x256xf32>
    %c0_12 = arith.constant 0 : index
    %c0_13 = arith.constant 0 : index
    %c0_14 = arith.constant 0 : index
    %14 = vector.load %arg6[%c0_12, %c0_13, %c0_14] : memref<1x8x256xf32, #tpu.memory_space<vmem>>, vector<1x8x256xf32>
    %15 = vector.shape_cast %14 : vector<1x8x256xf32> to vector<8x256xf32>
    %16 = vector.shape_cast %13 : vector<8x256xf32> to vector<1x8x256xf32>
    tpu.vector_store %arg6[%c0_12, %c0_13, %c0_14], %16 {strides = array<i32>} : memref<1x8x256xf32, #tpu.memory_space<vmem>>, vector<1x8x256xf32>,
    %17 = vector.extract_strided_slice %13 {offsets = [0, 0], sizes = [8, 128], strides = [1, 1]} : vector<8x256xf32> to vector<8x128xf32>
    %c0_15 = arith.constant 0 : index
    %c0_16 = arith.constant 0 : index
    %18 = vector.load %arg7[%c0_15, %c0_16] : memref<8x128xf32, #tpu.memory_space<vmem>>, vector<8x128xf32>
    tpu.vector_store %arg7[%c0_15, %c0_16], %17 {strides = array<i32>} : memref<8x128xf32, #tpu.memory_space<vmem>>, vector<8x128xf32>,
    return
  }
  func.func @transform_0(%arg0: i32) -> (i32, i32, i32) {
    %c0_i32 = arith.constant 0 : i32
    %c0_i32_0 = arith.constant 0 : i32
    %c0_i32_1 = arith.constant 0 : i32
    return %arg0, %c0_i32, %c0_i32_0 : i32, i32, i32
  }
  func.func @transform_1(%arg0: i32) -> (i32, i32) {
    %c0_i32 = arith.constant 0 : i32
    %c0_i32_0 = arith.constant 0 : i32
    %c0_i32_1 = arith.constant 0 : i32
    return %c0_i32, %c0_i32_0 : i32, i32
  }
  func.func @transform_2(%arg0: i32) -> (i32, i32) {
    %c0_i32 = arith.constant 0 : i32
    %c0_i32_0 = arith.constant 0 : i32
    %c0_i32_1 = arith.constant 0 : i32
    return %c0_i32, %c0_i32_0 : i32, i32
  }
  func.func @transform_3(%arg0: i32) -> (i32, i32) {
    %c0_i32 = arith.constant 0 : i32
    %c0_i32_0 = arith.constant 0 : i32
    %c0_i32_1 = arith.constant 0 : i32
    return %c0_i32, %c0_i32_0 : i32, i32
  }
  func.func @transform_4(%arg0: i32) -> (i32, i32) {
    %c0_i32 = arith.constant 0 : i32
    %c0_i32_0 = arith.constant 0 : i32
    %c0_i32_1 = arith.constant 0 : i32
    return %c0_i32, %c0_i32_0 : i32, i32
  }
  func.func @transform_5(%arg0: i32) -> (i32, i32, i32) {
    %c0_i32 = arith.constant 0 : i32
    %c0_i32_0 = arith.constant 0 : i32
    %c0_i32_1 = arith.constant 0 : i32
    return %arg0, %c0_i32, %c0_i32_0 : i32, i32, i32
  }
}

</mosaic_0001>

<bundles_post_ra>
// kernel: tpu_custom_call.1
= control target key start
LH: loop header
LB: loop body
LE: loop exit
PB: predicated region body
PF: predicated region fallthrough
CT: control target
= control target key end

     0   :  { %10 = vsyncpa [#allocation4], 0  ;;  %s452_s0 = inlined_call_operand.hbm [shape: f32[1,8,128], index: 0, kind: input, shape index: {}]   ;;  %s453_s1 = inlined_call_operand.hbm [shape: f32[8,128], index: 1, kind: input, shape index: {}]   ;;  %s454_s2 = inlined_call_operand.hbm [shape: f32[128,256], index: 2, kind: input, shape index: {}]   ;;  %s455_s3 = inlined_call_operand.hbm [shape: f32[128,256], index: 3, kind: input, shape index: {}]   ;;  %s456_s4 = inlined_call_operand.vmem [shape: f32[1,256], index: 4, kind: input, shape index: {}]   ;;  %s457_s5 = inlined_call_operand.hbm [shape: f32[1,8,256], index: 5, kind: output, shape index: {}]  }
   0x1   :  { %11 = vsyncpa [#allocation7], 0 }
   0x2   :  { %12 = vsyncpa [#allocation10], 0  ;;  %s30_s20 = sshll.u32 %s453_s1, 4  ;;  %s31_s20 = int_to_ptr.hbm [resolvable:$true] %s30_s20 }
   0x3   :  { %13 = vsyncpa [#allocation5], 0  ;;  %s397_s21 = smov [#allocation6]   ;;  %s19_s25 = sshll.u32 %s452_s0, 4  ;;  %s20_s25 = int_to_ptr.hbm [resolvable:$true] %s19_s25 }
   0x4   :  { %s32_s22 = sshll.u32 %s397_s21, 4  ;;  %s398_s26 = smov [#allocation3]   ;;  %s33_s22 = int_to_ptr.vmem [resolvable:$true] %s32_s22 }
   0x5   :  { %35 = dma.hbm_to_vmem [thread:$0]  %s31_s20, 128, %s33_s22, [#allocation7]  }
   0x6   :  { %s21_s27 = sshll.u32 %s398_s26, 4  ;;  %s40_s30 = sshll.u32 %s454_s2, 4  ;;  %s22_s27 = int_to_ptr.vmem [resolvable:$true] %s21_s27  ;;  %s41_s30 = int_to_ptr.hbm [resolvable:$true] %s40_s30 }
   0x7   :  { %24 = dma.hbm_to_vmem [thread:$0]  %s20_s25, 128, %s22_s27, [#allocation4]  }
   0x8   :  { %s399_s1 = smov [#allocation8]   ;;  %s53_s9 = sshll.u32 %s455_s3, 4  ;;  %s54_s9 = int_to_ptr.hbm [resolvable:$true] %s53_s9 }
   0x9   :  { %s42_s6 = sshll.u32 %s399_s1, 4  ;;  %s400_s10 = smov 256   ;;  %s43_s6 = int_to_ptr.vmem [resolvable:$true] %s42_s6 }
   0xa   :  { %s401_s0 = smov 16   ;;  %s402_s11 = smov [#allocation9]  }
   0xb   :  { %48 = dma.hbm_to_vmem [thread:$0]  %s41_s30, 4096, %s43_s6, [#allocation7], %s400_s10, %s400_s10, %s401_s0  }
   0xc   :  { %s55_s12 = sshll.u32 %s402_s11, 4  ;;  %s56_s12 = int_to_ptr.vmem [resolvable:$true] %s55_s12 }
   0xd   :  { %61 = dma.hbm_to_vmem [thread:$0]  %s54_s9, 4096, %s56_s12, [#allocation10], %s400_s10, %s400_s10, %s401_s0  }
   0xe   :  { %389 = dma.done.wait [#allocation4], 128  }
   0xf   :  { %390 = vsyncadd [#allocation4], 4294967168 }
  0x10   :  { %391 = dma.done.wait [#allocation7], 4224  }
  0x11   :  { %392 = vsyncadd [#allocation7], 4294963072 }
  0x12   :  { %393 = dma.done.wait [#allocation10], 4096  }
  0x13   :  { %394 = vsyncadd [#allocation10], 4294963200  ;;  %v118_v0 = vld [vmem:[#allocation8 + $0xf0] sm:$0xff]  ;;  %v119_v1 = vld [vmem:[#allocation8 + $0xf8] sm:$0xff]  ;;  %s403_s13 = smov [#allocation11]   ;;  %s250_s17 = sshll.u32 %s457_s5, 4  ;;  %s251_s17 = int_to_ptr.hbm [resolvable:$true] %s250_s17 }
  0x14   :  { %v116_v2 = vld [vmem:[#allocation8 + $0xe0] sm:$0xff]  ;;  %192 = vmatpush.msra.mxu2 %v118_v0  ;;  %212 = vmatpush.msra.mxu3 %v119_v1  ;;  %v117_v3 = vld [vmem:[#allocation8 + $0xe8] sm:$0xff]  ;;  %v114_v4 = vld [vmem:[#allocation8 + $0xd0] sm:$0xff]  ;;  %s248_s14 = sshll.u32 %s403_s13, 4  ;;  %s249_s14 = int_to_ptr.vmem [resolvable:$true] %s248_s14 }
  0x15   :  { %v115_v5 = vld [vmem:[#allocation8 + $0xd8] sm:$0xff]  ;;  %v150_v6 = vld [vmem:[#allocation9 + $0xf0] sm:$0xff]  ;;  %v148_v8 = vld [vmem:[#allocation9 + $0xe0] sm:$0xff] }
  0x16   :  { %v151_v7 = vld [vmem:[#allocation9 + $0xf8] sm:$0xff]  ;;  %193 = vmatpush.msra.mxu2 %v116_v2  ;;  %213 = vmatpush.msra.mxu3 %v117_v3  ;;  %v149_v9 = vld [vmem:[#allocation9 + $0xe8] sm:$0xff]  ;;  %v112_v10 = vld [vmem:[#allocation8 + $0xc0] sm:$0xff] }
  0x17   :  { %152 = vmatpush.msra.mxu0 %v150_v6  ;;  %172 = vmatpush.msra.mxu1 %v151_v7  ;;  %v113_v11 = vld [vmem:[#allocation8 + $0xc8] sm:$0xff]  ;;  %v146_v12 = vld [vmem:[#allocation9 + $0xd0] sm:$0xff]  ;;  %v147_v13 = vld [vmem:[#allocation9 + $0xd8] sm:$0xff] }
  0x18   :  { %194 = vmatpush.msra.mxu2 %v114_v4  ;;  %214 = vmatpush.msra.mxu3 %v115_v5  ;;  %v110_v14 = vld [vmem:[#allocation8 + $0xb0] sm:$0xff]  ;;  %v111_v15 = vld [vmem:[#allocation8 + $0xb8] sm:$0xff]  ;;  %v144_v16 = vld [vmem:[#allocation9 + $0xc0] sm:$0xff] }
  0x19   :  { %153 = vmatpush.msra.mxu0 %v148_v8  ;;  %173 = vmatpush.msra.mxu1 %v149_v9  ;;  %v145_v17 = vld [vmem:[#allocation9 + $0xc8] sm:$0xff]  ;;  %v108_v18 = vld [vmem:[#allocation8 + $0xa0] sm:$0xff]  ;;  %v142_v20 = vld [vmem:[#allocation9 + $0xb0] sm:$0xff] }
  0x1a   :  { %195 = vmatpush.msra.mxu2 %v112_v10  ;;  %215 = vmatpush.msra.mxu3 %v113_v11  ;;  %v109_v19 = vld [vmem:[#allocation8 + $0xa8] sm:$0xff]  ;;  %v143_v21 = vld [vmem:[#allocation9 + $0xb8] sm:$0xff]  ;;  %v106_v22 = vld [vmem:[#allocation8 + $0x90] sm:$0xff] }
  0x1b   :  { %154 = vmatpush.msra.mxu0 %v146_v12  ;;  %174 = vmatpush.msra.mxu1 %v147_v13  ;;  %v107_v23 = vld [vmem:[#allocation8 + $0x98] sm:$0xff]  ;;  %v140_v24 = vld [vmem:[#allocation9 + $0xa0] sm:$0xff]  ;;  %v141_v25 = vld [vmem:[#allocation9 + $0xa8] sm:$0xff] }
  0x1c   :  { %196 = vmatpush.msra.mxu2 %v110_v14  ;;  %216 = vmatpush.msra.mxu3 %v111_v15  ;;  %v104_v26 = vld [vmem:[#allocation8 + $0x80] sm:$0xff]  ;;  %v105_v27 = vld [vmem:[#allocation8 + $0x88] sm:$0xff]  ;;  %v138_v28 = vld [vmem:[#allocation9 + $0x90] sm:$0xff] }
  0x1d   :  { %155 = vmatpush.msra.mxu0 %v144_v16  ;;  %175 = vmatpush.msra.mxu1 %v145_v17  ;;  %v139_v29 = vld [vmem:[#allocation9 + $0x98] sm:$0xff]  ;;  %v102_v30 = vld [vmem:[#allocation8 + $0x70] sm:$0xff]  ;;  %v136_v32 = vld [vmem:[#allocation9 + $0x80] sm:$0xff] }
  0x1e   :  { %197 = vmatpush.msra.mxu2 %v108_v18  ;;  %217 = vmatpush.msra.mxu3 %v109_v19  ;;  %v103_v31 = vld [vmem:[#allocation8 + $0x78] sm:$0xff]  ;;  %v137_v33 = vld [vmem:[#allocation9 + $0x88] sm:$0xff]  ;;  %v100_v34 = vld [vmem:[#allocation8 + $0x60] sm:$0xff] }
  0x1f   :  { %156 = vmatpush.msra.mxu0 %v142_v20  ;;  %176 = vmatpush.msra.mxu1 %v143_v21  ;;  %v101_v35 = vld [vmem:[#allocation8 + $0x68] sm:$0xff]  ;;  %v134_v36 = vld [vmem:[#allocation9 + $0x70] sm:$0xff]  ;;  %v135_v37 = vld [vmem:[#allocation9 + $0x78] sm:$0xff] }
  0x20   :  { %198 = vmatpush.msra.mxu2 %v106_v22  ;;  %218 = vmatpush.msra.mxu3 %v107_v23  ;;  %v98_v38 = vld [vmem:[#allocation8 + $0x50] sm:$0xff]  ;;  %v99_v39 = vld [vmem:[#allocation8 + $0x58] sm:$0xff]  ;;  %v132_v40 = vld [vmem:[#allocation9 + $0x60] sm:$0xff] }
  0x21   :  { %157 = vmatpush.msra.mxu0 %v140_v24  ;;  %177 = vmatpush.msra.mxu1 %v141_v25  ;;  %v133_v41 = vld [vmem:[#allocation9 + $0x68] sm:$0xff]  ;;  %v96_v42 = vld [vmem:[#allocation8 + $0x40] sm:$0xff]  ;;  %v130_v44 = vld [vmem:[#allocation9 + $0x50] sm:$0xff] }
  0x22   :  { %199 = vmatpush.msra.mxu2 %v104_v26  ;;  %219 = vmatpush.msra.mxu3 %v105_v27  ;;  %v97_v43 = vld [vmem:[#allocation8 + $0x48] sm:$0xff]  ;;  %v131_v45 = vld [vmem:[#allocation9 + $0x58] sm:$0xff]  ;;  %v94_v46 = vld [vmem:[#allocation8 + $0x30] sm:$0xff] }
  0x23   :  { %158 = vmatpush.msra.mxu0 %v138_v28  ;;  %178 = vmatpush.msra.mxu1 %v139_v29  ;;  %v95_v47 = vld [vmem:[#allocation8 + $0x38] sm:$0xff]  ;;  %v128_v48 = vld [vmem:[#allocation9 + $0x40] sm:$0xff]  ;;  %v129_v49 = vld [vmem:[#allocation9 + $0x48] sm:$0xff] }
  0x24   :  { %200 = vmatpush.msra.mxu2 %v102_v30  ;;  %220 = vmatpush.msra.mxu3 %v103_v31  ;;  %v92_v50 = vld [vmem:[#allocation8 + $0x20] sm:$0xff]  ;;  %v93_v51 = vld [vmem:[#allocation8 + $0x28] sm:$0xff]  ;;  %v126_v52 = vld [vmem:[#allocation9 + $0x30] sm:$0xff] }
  0x25   :  { %159 = vmatpush.msra.mxu0 %v136_v32  ;;  %179 = vmatpush.msra.mxu1 %v137_v33  ;;  %v127_v53 = vld [vmem:[#allocation9 + $0x38] sm:$0xff]  ;;  %v90_v54 = vld [vmem:[#allocation8 + $0x10] sm:$0xff]  ;;  %v124_v56 = vld [vmem:[#allocation9 + $0x20] sm:$0xff] }
  0x26   :  { %201 = vmatpush.msra.mxu2 %v100_v34  ;;  %221 = vmatpush.msra.mxu3 %v101_v35  ;;  %v91_v55 = vld [vmem:[#allocation8 + $0x18] sm:$0xff]  ;;  %v125_v57 = vld [vmem:[#allocation9 + $0x28] sm:$0xff]  ;;  %v88_v58 = vld [vmem:[#allocation8] sm:$0xff] }
  0x27   :  { %160 = vmatpush.msra.mxu0 %v134_v36  ;;  %180 = vmatpush.msra.mxu1 %v135_v37  ;;  %v89_v59 = vld [vmem:[#allocation8 + $0x8] sm:$0xff]  ;;  %v86_v60 = vld [vmem:[#allocation3] sm:$0xff]  ;;  %v123_v62 = vld [vmem:[#allocation9 + $0x18] sm:$0xff] }
  0x28   :  { %202 = vmatpush.msra.mxu2 %v98_v38  ;;  %222 = vmatpush.msra.mxu3 %v99_v39  ;;  %v122_v61 = vld [vmem:[#allocation9 + $0x10] sm:$0xff]  ;;  %v120_v63 = vld [vmem:[#allocation9] sm:$0xff]  ;;  %v121_v0 = vld [vmem:[#allocation9 + $0x8] sm:$0xff] }
  0x29   :  { %161 = vmatpush.msra.mxu0 %v132_v40  ;;  %181 = vmatpush.msra.mxu1 %v133_v41  ;;  %v84_v1 = vld [vmem:[#allocation6] sm:$0xff]  ;;  %v232_v2 = vld [vmem:[%s456_s4] sm:$0x3] }
  0x2a   :  { %203 = vmatpush.msra.mxu2 %v96_v42  ;;  %223 = vmatpush.msra.mxu3 %v97_v43  ;;  %v234_v5 = vperm.slane %v232_v2, 0  ;;  %v235_v6 = vperm.slane %v232_v2, 1 }
  0x2b   :  { %162 = vmatpush.msra.mxu0 %v130_v44  ;;  %182 = vmatpush.msra.mxu1 %v131_v45 }
  0x2c   :  { %204 = vmatpush.msra.mxu2 %v94_v46  ;;  %224 = vmatpush.msra.mxu3 %v95_v47 }
  0x2d   :  { %163 = vmatpush.msra.mxu0 %v128_v48  ;;  %183 = vmatpush.msra.mxu1 %v129_v49 }
  0x2e   :  { %205 = vmatpush.msra.mxu2 %v92_v50  ;;  %225 = vmatpush.msra.mxu3 %v93_v51 }
  0x2f   :  { %164 = vmatpush.msra.mxu0 %v126_v52  ;;  %184 = vmatpush.msra.mxu1 %v127_v53 }
  0x30   :  { %206 = vmatpush.msra.mxu2 %v90_v54  ;;  %226 = vmatpush.msra.mxu3 %v91_v55 }
  0x31   :  { %165 = vmatpush.msra.mxu0 %v124_v56  ;;  %185 = vmatpush.msra.mxu1 %v125_v57 }
  0x32   :  { %207 = vmatpush.msra.mxu2 %v88_v58  ;;  %227 = vmatpush.msra.mxu3 %v89_v59 }
  0x33   :  { %208 = vmatmul.f32.vlgmr.msra.gmra.mxu2 %v86_v60  ;;  %228 = vmatmul.f32.vlgmr.msra.gmra.mxu3 %v86_v60 }
  0x34   :  { %166 = vmatpush.msra.mxu0 %v122_v61  ;;  %186 = vmatpush.msra.mxu1 %v123_v62 }
  0x36   :  { %167 = vmatpush.msra.mxu0 %v120_v63  ;;  %187 = vmatpush.msra.mxu1 %v121_v0 }
  0x37   :  { %168 = vmatmul.f32.vlgmr.msra.gmra.mxu0 %v84_v1  ;;  %188 = vmatmul.f32.vlgmr.msra.gmra.mxu1 %v84_v1 }
  0xb4   :  { %v169_v3 = vpop.f32.mrf.mxu0  ;;  %v189_v4 = vpop.f32.mrf.mxu1 }
  0xb6   :  { %v209_v7 = vpop.f32.mrf.mxu2  ;;  %v229_v8 = vpop.f32.mrf.mxu3 }
  0xb7   :  { %v210_v9 = vadd.f32 %v209_v7, %v169_v3  ;;  %v230_v10 = vadd.f32 %v229_v8, %v189_v4 }
  0xb9   :  { %v238_v11 = vadd.f32 %v234_v5, %v210_v9  ;;  %v239_v12 = vadd.f32 %v235_v6, %v230_v10 }
  0xbb   :  { %240 = vst [vmem:[#allocation11] sm:$0xff] %v238_v11 }
  0xbc   :  { %241 = vst [vmem:[#allocation11 + $0x8] sm:$0xff] %v239_v12 }
  0xbd   :  { %253 = dma.vmem_to_hbm [thread:$0]  %s249_s14, 256, %s251_s17, [#allocation5]  }
  0xbe   :  { %395 = dma.done.wait [#allocation5], 256  }
  0xbf   :  { %396 = vsyncadd [#allocation5], 4294967040 }
  0xc0   :  { %258 = vsyncpa [#allocation4], 1 }
  0xc1   :  { %259 = vsyncpa [#allocation7], 1 }
  0xc2   :  { %260 = vsyncpa [#allocation10], 1 }
  0xc3   :  { %261 = vsyncpa [#allocation5], 1 }

</bundles_post_ra>
